<compile_context>
chip_gen: v5e
topology: v5e:2x2
jax: 0.10.0
libtpu: 0.0.40
codegen_flags: <defaults>
</compile_context>

<pallas_src>
import math

import jax
import jax.numpy as jnp
from jax.experimental import pallas as pl
from jax.experimental.pallas import tpu as pltpu


# ----------------------------- Pallas kernel ------------------------------ #

def _encoder_kernel(x_ref, w1_ref, b1_ref, w2_ref, b2_ref, o_ref):
    # x_ref : (TM, K)        tile of flattened view rows (f32 or bf16 in HBM)
    # w1_ref: (K, H1p)       conv1 weight (full-spatial conv == matmul), bf16
    # b1_ref: (1, H1p)       f32
    # w2_ref: (H1p, Cp)      1x1x1 conv weight, bf16
    # b2_ref: (1, Cp)        f32
    # o_ref : (TM, Cp)       f32, lane-dense (Cp multiple of 128)
    x = x_ref[...].astype(w1_ref.dtype)                 # cast in VMEM, no HBM cost
    h = jnp.dot(x, w1_ref[...], preferred_element_type=jnp.float32)
    h = jnp.maximum(h + b1_ref[...], 0.0)               # bias + ReLU in f32
    o = jnp.dot(h.astype(w2_ref.dtype), w2_ref[...],
                preferred_element_type=jnp.float32) + b2_ref[...]
    o_ref[...] = o.astype(o_ref.dtype)


def _encoder_pallas(x_flat, w1, b1, w2, b2, *, tm=256):
    """Fused 2-layer encoder on rows of x_flat: [R, K] -> [R, Cp] (f32)."""
    R, K = x_flat.shape
    H1p = w1.shape[1]
    Cp = w2.shape[1]

    # Row tile: big tiles amortize per-grid-step overhead and fill the MXU.
    # If R <= tm the block equals the full array dim (always legal); otherwise
    # tm (a multiple of 8/128) tiles R and Pallas masks the ragged last block,
    # so no jnp.pad of the whole input is needed.
    block_rows = R if R <= tm else tm
    grid = (pl.cdiv(R, block_rows),)

    # VMEM footprint (double-buffered x/out tiles + weights) -> scoped limit.
    x_bytes = jnp.dtype(x_flat.dtype).itemsize
    w_bytes = jnp.dtype(w1.dtype).itemsize
    footprint = (2 * block_rows * K * x_bytes          # x tiles (double buffered)
                 + 2 * K * H1p * w_bytes               # W1
                 + 2 * H1p * Cp * w_bytes              # W2
                 + 2 * (H1p + Cp) * 4                  # biases
                 + 2 * block_rows * Cp * 4)            # out tiles
    vmem_limit = max(int(footprint * 1.5) + (1 << 20), 16 << 20)

    out = pl.pallas_call(
        _encoder_kernel,
        out_shape=jax.ShapeDtypeStruct((R, Cp), jnp.float32),
        grid_spec=pltpu.PrefetchScalarGridSpec(
            num_scalar_prefetch=0,
            grid=grid,
            in_specs=[
                pl.BlockSpec((block_rows, K), lambda i: (i, 0)),   # x tile
                pl.BlockSpec((K, H1p), lambda i: (0, 0)),          # W1 (resident)
                pl.BlockSpec((1, H1p), lambda i: (0, 0)),          # b1
                pl.BlockSpec((H1p, Cp), lambda i: (0, 0)),         # W2
                pl.BlockSpec((1, Cp), lambda i: (0, 0)),           # b2
            ],
            out_specs=pl.BlockSpec((block_rows, Cp), lambda i: (i, 0)),
        ),
        compiler_params=pltpu.CompilerParams(
            dimension_semantics=("parallel",),     # lets v7x shard rows over 2 TCs
            vmem_limit_bytes=vmem_limit),
    )(x_flat, w1, b1, w2, b2)

    return out


# --------------------------- parameter handling ---------------------------- #

def _round_up(x, m):
    return ((x + m - 1) // m) * m


def init_params(key, C, S, H1, C_out):
    k1, k2, k3, k4 = jax.random.split(key, 4)
    K = C * S * S * S
    # Conv3d(C, H1, kernel=S) weight: [H1, C, S, S, S] -> flattened [K, H1]
    w1 = jax.random.normal(k1, (H1, C, S, S, S), jnp.float32) * (1.0 / K) ** 0.5
    w1 = w1.reshape(H1, K).T
    b1 = jax.random.normal(k2, (1, H1), jnp.float32) * 0.01
    # Conv3d(H1, C_out, kernel=1) weight: [C_out, H1] -> [H1, C_out]
    w2 = jax.random.normal(k3, (C_out, H1), jnp.float32) * (1.0 / H1) ** 0.5
    w2 = w2.T
    b2 = jax.random.normal(k4, (1, C_out), jnp.float32) * 0.01
    return dict(w1=w1, b1=b1, w2=w2, b2=b2)


def prepare_params(params, compute_dtype=jnp.bfloat16):
    """Pad feature dims to 128 lanes and store weights in bf16 (halves weight HBM)."""
    w1, b1, w2, b2 = params["w1"], params["b1"], params["w2"], params["b2"]
    K, H1 = w1.shape
    C_out = w2.shape[1]
    H1p = _round_up(H1, 128)
    Cp = _round_up(C_out, 128)
    w1p = jnp.zeros((K, H1p), compute_dtype).at[:, :H1].set(w1.astype(compute_dtype))
    b1p = jnp.zeros((1, H1p), jnp.float32).at[:, :H1].set(b1)
    w2p = jnp.zeros((H1p, Cp), compute_dtype).at[:H1, :C_out].set(w2.astype(compute_dtype))
    b2p = jnp.zeros((1, Cp), jnp.float32).at[:, :C_out].set(b2)
    return dict(w1=w1p, b1=b1p, w2=w2p, b2=b2p, C_out=C_out)


# --------------------------- ViewPairEncoder ------------------------------- #

def view_pair_encoder(x, prepared, *, tm=256):
    """x: [B, 2, C, S, S, S] (PyTorch NCDHW per view) -> [B, 2*C_out]."""
    B = x.shape[0]
    assert x.shape[1] == 2
    K = math.prod(x.shape[2:])
    C_out = prepared["C_out"]
    # Free reshape (x is contiguous): rows are [b0 v0, b0 v1, b1 v0, b1 v1, ...]
    xs = x.reshape(B * 2, K)
    y = _encoder_pallas(xs, prepared["w1"], prepared["b1"],
                        prepared["w2"], prepared["b2"], tm=tm)    # [2B, Cp]
    # Drop lane padding, then directsum + _flatten_base_space == reshape to
    # [B, 2*C_out] (per-batch view order matches fiber concatenation order).
    return y[:, :C_out].reshape(B, 2 * C_out)


def _reference(x, params):
    B = x.shape[0]
    K = params["w1"].shape[0]
    C_out = params["w2"].shape[1]
    xs = x.reshape(B * 2, K)
    h = jnp.maximum(xs @ params["w1"] + params["b1"], 0.0)
    y = h @ params["w2"] + params["b2"]
    return y.reshape(B, 2 * C_out)


if __name__ == "__main__":
    B, C, S = 2, 4, 4          # two views of a CxSxSxS voxel grid
    H1, C_out = 32, 16

    key = jax.random.PRNGKey(0)
    kx, kp = jax.random.split(key)
    x = jax.random.normal(kx, (B, 2, C, S, S, S), jnp.float32)
    params = init_params(kp, C, S, H1, C_out)
    prepared = prepare_params(params)   # bf16 + 128-lane padded weights, done once

    y = view_pair_encoder(x, prepared)
    y = jax.block_until_ready(y)

    assert y.shape == (B, 2 * C_out), y.shape
    y_ref = _reference(x, params)
    # bf16 matmul inputs with f32 accumulation -> ~1e-2 relative error budget.
    assert jnp.allclose(y, y_ref, atol=5e-2, rtol=5e-2)

    print("KERNEL_OK")
</pallas_src>

<mosaic_0001>
module attributes {stable_mosaic.version = 11 : i64} {
  func.func @_encoder_kernel(%arg0: i32, %arg1: memref<4x256xf32, #tpu.memory_space<vmem>>, %arg2: memref<256x128xbf16, #tpu.memory_space<vmem>>, %arg3: memref<1x128xf32, #tpu.memory_space<vmem>>, %arg4: memref<128x128xbf16, #tpu.memory_space<vmem>>, %arg5: memref<1x128xf32, #tpu.memory_space<vmem>>, %arg6: memref<4x128xf32, #tpu.memory_space<vmem>>) attributes {dimension_semantics = [#tpu.dimension_semantics<parallel>], iteration_bounds = array<i64: 1>, scalar_prefetch = 0 : i64, scratch_operands = 0 : i64, tpu.core_type = #tpu.core_type<tc>, window_params = [{transform_indices = @transform_0, window_bounds = array<i64: 4, 256>}, {pipeline_mode = #tpu.pipeline_mode<synchronous>, transform_indices = @transform_1, window_bounds = array<i64: 256, 128>}, {pipeline_mode = #tpu.pipeline_mode<synchronous>, transform_indices = @transform_2, window_bounds = array<i64: 1, 128>}, {pipeline_mode = #tpu.pipeline_mode<synchronous>, transform_indices = @transform_3, window_bounds = array<i64: 128, 128>}, {pipeline_mode = #tpu.pipeline_mode<synchronous>, transform_indices = @transform_4, window_bounds = array<i64: 1, 128>}, {transform_indices = @transform_5, window_bounds = array<i64: 4, 128>}]} {
    %c0 = arith.constant 0 : index
    %c0_0 = arith.constant 0 : index
    %0 = vector.load %arg1[%c0, %c0_0] : memref<4x256xf32, #tpu.memory_space<vmem>>, vector<4x256xf32>
    %1 = arith.truncf %0 : vector<4x256xf32> to vector<4x256xbf16>
    %c0_1 = arith.constant 0 : index
    %c0_2 = arith.constant 0 : index
    %2 = vector.load %arg2[%c0_1, %c0_2] : memref<256x128xbf16, #tpu.memory_space<vmem>>, vector<256x128xbf16>
    %cst = arith.constant dense<0.000000e+00> : vector<4x128xf32>
    %3 = tpu.matmul %1, %2, %cst {dimension_numbers = #tpu.dot_dimension_numbers<[1], [0], [0], [1], [0, 0, 1, 1], [], []>} : vector<4x256xbf16>, vector<256x128xbf16>, vector<4x128xf32> -> vector<4x128xf32>
    %c0_3 = arith.constant 0 : index
    %c0_4 = arith.constant 0 : index
    %4 = vector.load %arg3[%c0_3, %c0_4] : memref<1x128xf32, #tpu.memory_space<vmem>>, vector<1x128xf32>
    %5 = vector.broadcast %4 : vector<1x128xf32> to vector<4x128xf32>
    %6 = arith.addf %3, %5 : vector<4x128xf32>
    %cst_5 = arith.constant 0.000000e+00 : f32
    %7 = vector.broadcast %cst_5 : f32 to vector<4x128xf32>
    %8 = arith.maximumf %6, %7 : vector<4x128xf32>
    %9 = arith.truncf %8 : vector<4x128xf32> to vector<4x128xbf16>
    %c0_6 = arith.constant 0 : index
    %c0_7 = arith.constant 0 : index
    %10 = vector.load %arg4[%c0_6, %c0_7] : memref<128x128xbf16, #tpu.memory_space<vmem>>, vector<128x128xbf16>
    %cst_8 = arith.constant dense<0.000000e+00> : vector<4x128xf32>
    %11 = tpu.matmul %9, %10, %cst_8 {dimension_numbers = #tpu.dot_dimension_numbers<[1], [0], [0], [1], [0, 0, 1, 1], [], []>} : vector<4x128xbf16>, vector<128x128xbf16>, vector<4x128xf32> -> vector<4x128xf32>
    %c0_9 = arith.constant 0 : index
    %c0_10 = arith.constant 0 : index
    %12 = vector.load %arg5[%c0_9, %c0_10] : memref<1x128xf32, #tpu.memory_space<vmem>>, vector<1x128xf32>
    %13 = vector.broadcast %12 : vector<1x128xf32> to vector<4x128xf32>
    %14 = arith.addf %11, %13 : vector<4x128xf32>
    %c0_11 = arith.constant 0 : index
    %c0_12 = arith.constant 0 : index
    %15 = vector.load %arg6[%c0_11, %c0_12] : memref<4x128xf32, #tpu.memory_space<vmem>>, vector<4x128xf32>
    tpu.vector_store %arg6[%c0_11, %c0_12], %14 {strides = array<i32>} : memref<4x128xf32, #tpu.memory_space<vmem>>, vector<4x128xf32>,
    return
  }
  func.func @transform_0(%arg0: i32) -> (i32, i32) {
    %c0_i32 = arith.constant 0 : i32
    %c0_i32_0 = arith.constant 0 : i32
    return %arg0, %c0_i32 : i32, i32
  }
  func.func @transform_1(%arg0: i32) -> (i32, i32) {
    %c0_i32 = arith.constant 0 : i32
    %c0_i32_0 = arith.constant 0 : i32
    %c0_i32_1 = arith.constant 0 : i32
    return %c0_i32, %c0_i32_0 : i32, i32
  }
  func.func @transform_2(%arg0: i32) -> (i32, i32) {
    %c0_i32 = arith.constant 0 : i32
    %c0_i32_0 = arith.constant 0 : i32
    %c0_i32_1 = arith.constant 0 : i32
    return %c0_i32, %c0_i32_0 : i32, i32
  }
  func.func @transform_3(%arg0: i32) -> (i32, i32) {
    %c0_i32 = arith.constant 0 : i32
    %c0_i32_0 = arith.constant 0 : i32
    %c0_i32_1 = arith.constant 0 : i32
    return %c0_i32, %c0_i32_0 : i32, i32
  }
  func.func @transform_4(%arg0: i32) -> (i32, i32) {
    %c0_i32 = arith.constant 0 : i32
    %c0_i32_0 = arith.constant 0 : i32
    %c0_i32_1 = arith.constant 0 : i32
    return %c0_i32, %c0_i32_0 : i32, i32
  }
  func.func @transform_5(%arg0: i32) -> (i32, i32) {
    %c0_i32 = arith.constant 0 : i32
    %c0_i32_0 = arith.constant 0 : i32
    return %arg0, %c0_i32 : i32, i32
  }
}

</mosaic_0001>

<bundles_post_ra>
// kernel: tpu_custom_call.1
= control target key start
LH: loop header
LB: loop body
LE: loop exit
PB: predicated region body
PF: predicated region fallthrough
CT: control target
= control target key end

     0   :  { %10 = vsyncpa [#allocation3], 0  ;;  %s619_s0 = inlined_call_operand.hbm [shape: f32[4,256], index: 0, kind: input, shape index: {}]   ;;  %s620_s1 = inlined_call_operand.hbm [shape: bf16[256,128], index: 1, kind: input, shape index: {}]   ;;  %s621_s2 = inlined_call_operand.vmem [shape: f32[1,128], index: 2, kind: input, shape index: {}]   ;;  %s622_s3 = inlined_call_operand.hbm [shape: bf16[128,128], index: 3, kind: input, shape index: {}]   ;;  %s623_s4 = inlined_call_operand.vmem [shape: f32[1,128], index: 4, kind: input, shape index: {}]   ;;  %s624_s5 = inlined_call_operand.hbm [shape: f32[4,128], index: 5, kind: output, shape index: {}]  }
   0x1   :  { %11 = vsyncpa [#allocation6], 0  ;;  %s28_s20 = sshll.u32 %s620_s1, 4  ;;  %s29_s20 = int_to_ptr.hbm [resolvable:$true] %s28_s20 }
   0x2   :  { %12 = vsyncpa [#allocation4], 0  ;;  %s565_s21 = smov [#allocation5]   ;;  %s18_s25 = sshll.u32 %s619_s0, 4  ;;  %s19_s25 = int_to_ptr.hbm [resolvable:$true] %s18_s25 }
   0x3   :  { %s30_s22 = sshll.u32 %s565_s21, 4  ;;  %s566_s26 = smov 64   ;;  %s31_s22 = int_to_ptr.vmem [resolvable:$true] %s30_s22 }
   0x4   :  { %s567_s27 = smov 4   ;;  %s568_s28 = smov [#allocation2]  }
   0x5   :  { %36 = dma.hbm_to_vmem [thread:$0]  %s29_s20, 2048, %s31_s22, [#allocation6], %s566_s26, %s566_s26, %s567_s27  }
   0x6   :  { %s20_s29 = sshll.u32 %s568_s28, 4  ;;  %s43_s7 = sshll.u32 %s622_s3, 4  ;;  %s21_s29 = int_to_ptr.vmem [resolvable:$true] %s20_s29  ;;  %s44_s7 = int_to_ptr.hbm [resolvable:$true] %s43_s7 }
   0x7   :  { %23 = dma.hbm_to_vmem [thread:$0]  %s19_s25, 128, %s21_s29, [#allocation3]  }
   0x8   :  { %s569_s1 = smov [#allocation7]  }
   0x9   :  { %s45_s8 = sshll.u32 %s569_s1, 4  ;;  %s46_s8 = int_to_ptr.vmem [resolvable:$true] %s45_s8 }
   0xa   :  { %51 = dma.hbm_to_vmem [thread:$0]  %s44_s7, 1024, %s46_s8, [#allocation6], %s566_s26, %s566_s26, %s567_s27  }
   0xb   :  { %559 = dma.done.wait [#allocation3], 128  }
   0xc   :  { %560 = vsyncadd [#allocation3], 4294967168 }
   0xd   :  { %561 = dma.done.wait [#allocation6], 3072  }
   0xe   :  { %562 = vsyncadd [#allocation6], 4294964224  ;;  %v438_v0 = vld [vmem:[#allocation5 + $0x38] sm:$0xff]  ;;  %v437_v2 = vld [vmem:[#allocation5 + $0x30] sm:$0xff]  ;;  %s570_s11 = smov [#allocation8]   ;;  %s324_s15 = sshll.u32 %s624_s5, 4  ;;  %s325_s15 = int_to_ptr.hbm [resolvable:$true] %s324_s15 }
   0xf   :  { %v446_v1 = vld [vmem:[#allocation5 + $0x78] sm:$0xff]  ;;  %207 = vmatpush.bf16.msra.mxu0 %v438_v0  ;;  %v445_v3 = vld [vmem:[#allocation5 + $0x70] sm:$0xff]  ;;  %v436_v6 = vld [vmem:[#allocation5 + $0x28] sm:$0xff]  ;;  %s322_s12 = sshll.u32 %s570_s11, 4  ;;  %s323_s12 = int_to_ptr.vmem [resolvable:$true] %s322_s12 }
  0x10   :  { %220 = vmatpush.bf16.msra.mxu1 %v446_v1  ;;  %v66_v4 = vld [vmem:[#allocation2] sm:$0xff]  ;;  %v444_v7 = vld [vmem:[#allocation5 + $0x68] sm:$0xff]  ;;  %v453_v8 = vld [vmem:[#allocation7 + $0x30] sm:$0xff] }
  0x11   :  { %v454_v5 = vld [vmem:[#allocation7 + $0x38] sm:$0xff]  ;;  %68 = vst [vmem:[#allocation1] ss:$2 sm:$0xff] %v66_v4  ;;  %v435_v9 = vld [vmem:[#allocation5 + $0x20] sm:$0xff]  ;;  %v452_v11 = vld [vmem:[#allocation7 + $0x28] sm:$0xff] }
  0x12   :  { %303 = vmatpush.bf16.msra.mxu2 %v454_v5  ;;  %v443_v10 = vld [vmem:[#allocation5 + $0x60] sm:$0xff]  ;;  %v434_v12 = vld [vmem:[#allocation5 + $0x18] sm:$0xff]  ;;  %v433_v15 = vld [vmem:[#allocation5 + $0x10] sm:$0xff] }
  0x13   :  { %208 = vmatpush.bf16.msra.mxu0 %v437_v2  ;;  %v442_v13 = vld [vmem:[#allocation5 + $0x58] sm:$0xff]  ;;  %v451_v14 = vld [vmem:[#allocation7 + $0x20] sm:$0xff]  ;;  %v441_v16 = vld [vmem:[#allocation5 + $0x50] sm:$0xff] }
  0x14   :  { %221 = vmatpush.bf16.msra.mxu1 %v445_v3  ;;  %v450_v17 = vld [vmem:[#allocation7 + $0x18] sm:$0xff]  ;;  %v432_v18 = vld [vmem:[#allocation5 + $0x8] sm:$0xff]  ;;  %v449_v20 = vld [vmem:[#allocation7 + $0x10] sm:$0xff] }
  0x15   :  { %v440_v19 = vld [vmem:[#allocation5 + $0x48] sm:$0xff]  ;;  %v431_v21 = vld [vmem:[#allocation5] sm:$0xff]  ;;  %v461_v29 = vld [vmem:[%s621_s2] ss:$0 sm:$0xff] }
  0x16   :  { %304 = vmatpush.bf16.msra.mxu2 %v453_v8  ;;  %v439_v22 = vld [vmem:[#allocation5 + $0x40] sm:$0xff]  ;;  %v448_v27 = vld [vmem:[#allocation7 + $0x8] sm:$0xff]  ;;  %v462_v38 = vld [vmem:[%s623_s4] ss:$0 sm:$0xff] }
  0x17   :  { %209 = vmatpush.bf16.msra.mxu0 %v436_v6  ;;  %v447_v28 = vld [vmem:[#allocation7] sm:$0xff] }
  0x18   :  { %222 = vmatpush.bf16.msra.mxu1 %v444_v7  ;;  %v69_v23 = vld.sshfl [vmem:[#allocation1] sm:$0xff pattern:$0x75316420]  ;;  %v70_v24 = vld.sshfl [vmem:[#allocation1 + $0x8] sm:$0xff pattern:$0x75316420] }
  0x19   :  { %v73_v25 = vpack.c.bf16 %v69_v23, %v69_v23  ;;  %v74_v26 = vpack.c.bf16 %v70_v24, %v70_v24 }
  0x1a   :  { %305 = vmatpush.bf16.msra.mxu2 %v452_v11 }
  0x1b   :  { %210 = vmatpush.bf16.msra.mxu0 %v435_v9 }
  0x1c   :  { %223 = vmatpush.bf16.msra.mxu1 %v443_v10 }
  0x1e   :  { %306 = vmatpush.bf16.msra.mxu2 %v451_v14 }
  0x1f   :  { %211 = vmatpush.bf16.msra.mxu0 %v434_v12 }
  0x20   :  { %224 = vmatpush.bf16.msra.mxu1 %v442_v13 }
  0x22   :  { %307 = vmatpush.bf16.msra.mxu2 %v450_v17 }
  0x23   :  { %212 = vmatpush.bf16.msra.mxu0 %v433_v15 }
  0x24   :  { %225 = vmatpush.bf16.msra.mxu1 %v441_v16 }
  0x26   :  { %308 = vmatpush.bf16.msra.mxu2 %v449_v20 }
  0x27   :  { %213 = vmatpush.bf16.msra.mxu0 %v432_v18 }
  0x28   :  { %226 = vmatpush.bf16.msra.mxu1 %v440_v19 }
  0x2a   :  { %309 = vmatpush.bf16.msra.mxu2 %v448_v27 }
  0x2b   :  { %214 = vmatpush.bf16.msra.mxu0 %v431_v21 }
  0x2c   :  { %227 = vmatpush.bf16.msra.mxu1 %v439_v22 }
  0x2e   :  { %215 = vmatmul.bf16.vlgmr.msra.gmra.mxu0 %v73_v25  ;;  %310 = vmatpush.bf16.msra.mxu2 %v447_v28 }
  0x2f   :  { %228 = vmatmul.bf16.vlgmr.msra.gmra.mxu1 %v74_v26 }
  0xab   :  { %v216_v30 = vpop.f32.mrf.mxu0 }
  0xac   :  { %v229_v31 = vpop.f32.mrf.mxu1  ;;  %v217_v32 = vadd.f32 %v461_v29, %v216_v30 }
  0xae   :  { %v230_v33 = vadd.f32 %v229_v31, %v217_v32 }
  0xb0   :  { %v233_v34 = vmax.f32 %v230_v33, 0.0 }
  0xb2   :  { %v234_v35 = vpack.c.bf16 %v233_v34, %v233_v34 }
  0xb3   :  { %v218_v36 = vpop.f32.mrf.mxu0 }
  0xb4   :  { %v231_v37 = vpop.f32.mrf.mxu1  ;;  %311 = vmatmul.bf16.vlgmr.msra.gmra.mxu2 %v234_v35 }
 0x137   :  { %v312_v39 = vpop.f32.mrf.mxu2 }
 0x138   :  { %v313_v40 = vadd.f32 %v462_v38, %v312_v39 }
 0x13a   :  { %316 = vst [vmem:[#allocation8] sm:$0xf] %v313_v40 }
 0x13b   :  { %327 = dma.vmem_to_hbm [thread:$0]  %s323_s12, 64, %s325_s15, [#allocation4]  }
 0x13f   :  { %v314_v41 = vpop.f32.mrf.mxu2 }
 0x140   :  { %563 = dma.done.wait [#allocation4], 64  }
 0x141   :  { %564 = vsyncadd [#allocation4], 4294967232 }
 0x142   :  { %332 = vsyncpa [#allocation3], 1 }
 0x143   :  { %333 = vsyncpa [#allocation6], 1 }
 0x144   :  { %334 = vsyncpa [#allocation4], 1 }

</bundles_post_ra>
